<compile_context>
chip_gen: v5e
topology: v5e:2x2
jax: 0.10.0
libtpu: 0.0.40
codegen_flags: <defaults>
</compile_context>

<pallas_src>
import math
import functools
import numpy as np

import jax
import jax.numpy as jnp
from jax.experimental import pallas as pl
from jax.experimental.pallas import tpu as pltpu


def _round_up(x, m):
    return (x + m - 1) // m * m


def _pick_tile(dim, max_tile, align=128):
    # Largest multiple of `align` <= max_tile that divides `dim` (dim % align == 0).
    t = min(max_tile, dim)
    t = max((t // align) * align, align)
    while dim % t:
        t -= align
    return t


def _default_tile_m():
    # v5e MXU is 4x(128x128) -> 128-row LHS tiles; v6e/v7x MXU is 2x(256x256).
    try:
        kind = jax.devices()[0].device_kind.lower()
    except Exception:
        return 256
    return 128 if "v5" in kind else 256


_TILE_M = _default_tile_m()
_VMEM_LIMIT = 32 * 1024 * 1024   # explicit budget; safe on v5e/v6e/v7x


# ---------- Pallas tiled matmul: bf16 operands, f32 accum, fused epilogue ----------
def _matmul_body(a_ref, b_ref, bias_ref, res_ref, o_ref, acc_ref, relu, pre_relu):
    @pl.when(pl.program_id(2) == 0)
    def _():
        acc_ref[...] = jnp.zeros_like(acc_ref)

    a = a_ref[...]
    if pre_relu:
        a = jnp.maximum(a, 0.0)          # fused leading ReLU (VPU, free slot)
    acc_ref[...] += jnp.dot(a, b_ref[...], preferred_element_type=jnp.float32)

    @pl.when(pl.program_id(2) == pl.num_programs(2) - 1)
    def _():
        r = acc_ref[...] + bias_ref[...]
        if res_ref is not None:
            r = r + res_ref[...].astype(jnp.float32)   # fused residual add
        if relu:
            r = jnp.maximum(r, 0.0)
        o_ref[...] = r.astype(o_ref.dtype)


def _make_matmul_kernel(relu, pre_relu, has_res):
    if has_res:
        def kernel(a_ref, b_ref, bias_ref, res_ref, o_ref, acc_ref):
            _matmul_body(a_ref, b_ref, bias_ref, res_ref, o_ref, acc_ref,
                         relu, pre_relu)
    else:
        def kernel(a_ref, b_ref, bias_ref, o_ref, acc_ref):
            _matmul_body(a_ref, b_ref, bias_ref, None, o_ref, acc_ref,
                         relu, pre_relu)
    return kernel


def matmul_bias(a, w2d, bias2d, n_out, relu=False, pre_relu=False,
                residual=None, out_dtype=jnp.bfloat16):
    """a:(M,K); w2d:(Kp,Np) bf16 pre-padded at init; bias2d:(1,Np) f32;
    residual: optional (M, n_out) tensor added in the epilogue."""
    M, K = a.shape
    Kp, Np = w2d.shape
    a = a.astype(jnp.bfloat16)
    if K != Kp:                                   # only the tiny first FE conv (K=48)
        a = jnp.pad(a, ((0, 0), (0, Kp - K)))
    tm = _TILE_M if M >= _TILE_M else _round_up(M, 8)
    Mp = _round_up(M, tm)
    if Mp != M:
        a = jnp.pad(a, ((0, Mp - M), (0, 0)))
    tk = _pick_tile(Kp, 512)
    tn = _pick_tile(Np, 256)
    grid = (Mp // tm, Np // tn, Kp // tk)

    in_specs = [pl.BlockSpec((tm, tk), lambda i, j, k: (i, k)),
                pl.BlockSpec((tk, tn), lambda i, j, k: (k, j)),
                pl.BlockSpec((1, tn), lambda i, j, k: (0, j))]
    args = [a, w2d, bias2d]
    has_res = residual is not None
    if has_res:
        res = residual.astype(jnp.bfloat16)
        if res.shape != (Mp, Np):
            res = jnp.pad(res, ((0, Mp - M), (0, Np - n_out)))
        # index_map ignores k -> block index identical across the K axis, so the
        # pipeline keeps the residual tile resident (no refetch per k step).
        in_specs.append(pl.BlockSpec((tm, tn), lambda i, j, k: (i, j)))
        args.append(res)

    out = pl.pallas_call(
        _make_matmul_kernel(relu, pre_relu, has_res),
        out_shape=jax.ShapeDtypeStruct((Mp, Np), out_dtype),
        grid_spec=pltpu.PrefetchScalarGridSpec(
            num_scalar_prefetch=0,
            grid=grid,
            in_specs=in_specs,
            out_specs=pl.BlockSpec((tm, tn), lambda i, j, k: (i, j)),
            scratch_shapes=[pltpu.VMEM((tm, tn), jnp.float32)]),
        compiler_params=pltpu.CompilerParams(
            dimension_semantics=("parallel", "parallel", "arbitrary"),
            vmem_limit_bytes=_VMEM_LIMIT),
    )(*args)
    return out[:M, :n_out]


# --------------------------------- conv layers ----------------------------------------
def pack_conv(w, b):
    """HWIO conv weight -> padded (Kp, Np) bf16 GEMM weight + (1, Np) f32 bias."""
    kh, kw, cin, cout = w.shape
    K = kh * kw * cin
    Kp = _round_up(K, 128)
    Np = _round_up(cout, 128)
    w2d = jnp.pad(w.reshape(K, cout).astype(jnp.bfloat16),
                  ((0, Kp - K), (0, Np - cout)))
    b2d = jnp.pad(b.astype(jnp.float32).reshape(1, -1), ((0, 0), (0, Np - cout)))
    return {'w': w2d, 'b': b2d, 'kh': kh, 'kw': kw, 'cin': cin, 'cout': cout}


def conv2d(x, p, stride=1, padding=0, relu=False, pre_relu=False,
           residual=None, out_dtype=jnp.bfloat16):
    # x: NHWC (bf16 activations)
    N, H, W, C = x.shape
    kh, kw, cout = p['kh'], p['kw'], p['cout']
    Ho = (H + 2 * padding - kh) // stride + 1
    Wo = (W + 2 * padding - kw) // stride + 1
    if kh == 1 and kw == 1 and stride == 1 and padding == 0:
        patches = x.reshape(N * H * W, C)                      # 1x1: pure reshape
    elif (kh == stride and kw == stride and padding == 0
          and H % stride == 0 and W % stride == 0):
        # non-overlapping patch embedding -> space-to-depth, no patch duplication
        patches = x.reshape(N, Ho, kh, Wo, kw, C)
        patches = jnp.transpose(patches, (0, 1, 3, 2, 4, 5)).reshape(
            N * Ho * Wo, kh * kw * C)
    else:
        # TODO(synk): fuse the shifted-window gather into the matmul K axis.
        xp = jnp.pad(x, ((0, 0), (padding, padding), (padding, padding), (0, 0)))
        cols = [xp[:, dy:dy + stride * Ho:stride, dx:dx + stride * Wo:stride, :]
                for dy in range(kh) for dx in range(kw)]
        patches = jnp.stack(cols, axis=3).reshape(N * Ho * Wo, kh * kw * C)
    res2d = None
    if residual is not None:
        res2d = residual.reshape(N * Ho * Wo, cout)
    y = matmul_bias(patches, p['w'], p['b'], cout, relu=relu, pre_relu=pre_relu,
                    residual=res2d, out_dtype=out_dtype)
    return y.reshape(N, Ho, Wo, cout)


# ConvTranspose2d(cin, cout, 4, stride=2, padding=1) == 4 stride-1 2x2 sub-pixel convs.
_DECONV_TAP = ((3, 1), (2, 0))   # [output phase][window offset] -> 4x4 kernel index


def pack_deconv(w, b):
    """w: (4,4,cin,cout), (ky,kx,cin,cout) layout of torch ConvTranspose2d weight."""
    subs = []
    for r in range(2):
        for s in range(2):
            sub = jnp.stack(
                [jnp.stack([w[_DECONV_TAP[r][d], _DECONV_TAP[s][e]]
                            for e in range(2)], axis=0)
                 for d in range(2)], axis=0)                   # (2,2,cin,cout)
            subs.append(pack_conv(sub, b))
    return subs


def conv_transpose2d(x, subs, pre_relu=False, out_dtype=jnp.bfloat16):
    N, H, W, C = x.shape
    xp = jnp.pad(x, ((0, 0), (1, 1), (1, 1), (0, 0)))
    phases = []
    for r in range(2):
        for s in range(2):
            win = xp[:, r:r + H + 1, s:s + W + 1, :]
            phases.append(conv2d(win, subs[2 * r + s], stride=1, padding=0,
                                 relu=False, pre_relu=pre_relu,
                                 out_dtype=out_dtype))
    cout = phases[0].shape[-1]
    y = jnp.stack(phases, axis=3).reshape(N, H, W, 2, 2, cout)
    y = jnp.transpose(y, (0, 1, 3, 2, 4, 5)).reshape(N, 2 * H, 2 * W, cout)
    return y


def resblock(x, p):
    # Sequential(ReLU, Conv3x3, ReLU, Conv1x1) + x, with the leading ReLU fused
    # into the 3x3 GEMM prologue and the residual add fused into the 1x1 epilogue.
    h = conv2d(x, p['c1'], stride=1, padding=1, relu=True, pre_relu=True)
    return conv2d(h, p['c2'], stride=1, padding=0, relu=False, residual=x)


def decoder(x, p, out_dtype=jnp.bfloat16):
    h = conv2d(x, p['conv_in'], stride=1, padding=1, relu=False)
    for rp in p['res']:
        h = resblock(h, rp)
    # ReLU before the deconv is fused into each sub-pixel conv's GEMM prologue.
    return conv_transpose2d(h, p['deconv'], pre_relu=True, out_dtype=out_dtype)


# ------------------------- Gaussian vector quantizer (tiled) --------------------------
def _vq_kernel(z_ref, cbst_ref, cwsq_ref, cb_ref,
               zq_ref, idx_ref, hist_ref, plogp_ref, sqd_ref, *, npix, tp):
    i = pl.program_id(0)
    z = z_ref[...].astype(jnp.float32)                         # (tp, D), bf16 -> f32
    nrm = jnp.sqrt(jnp.sum(z * z, axis=-1, keepdims=True))
    zn = z / jnp.maximum(nrm, 1e-12)                           # F.normalize(dim=channel)
    # logit up to a per-row constant shift:  2*w*zn.cb - w*||cb||^2
    logit = jnp.dot(zn, cbst_ref[...],
                    preferred_element_type=jnp.float32) - cwsq_ref[...]
    m = jnp.max(logit, axis=-1, keepdims=True)
    e = jnp.exp(logit - m)
    s = jnp.sum(e, axis=-1, keepdims=True)
    p = e * pl.reciprocal(s, approx=True)                      # softmax
    logp = (logit - m) - jnp.log(s)                            # log_softmax
    K = logit.shape[-1]
    lane = jax.lax.broadcasted_iota(jnp.int32, logit.shape, 1)
    idx = jnp.min(jnp.where(logit >= m, lane, K), axis=-1, keepdims=True)  # argmax
    idx_ref[...] = idx
    row = jax.lax.broadcasted_iota(jnp.int32, (tp, 1), 0) + i * tp
    rmask = (row < npix).astype(jnp.float32)                   # mask padded rows
    onehot = jnp.where(lane == idx, 1.0, 0.0) * rmask          # encodings_hard
    zq = jnp.dot(onehot, cb_ref[...], preferred_element_type=jnp.float32)
    zq_ref[...] = zq.astype(zq_ref.dtype)
    hist_ref[...] = jnp.sum(onehot, axis=0, keepdims=True)     # per-tile code histogram
    plogp_ref[...] = jnp.sum(p * logp * rmask, axis=(0, 1), keepdims=True)
    dz = (zn - zq) * rmask
    sqd_ref[...] = jnp.sum(dz * dz, axis=(0, 1), keepdims=True)


def vq_forward(feat_nhwc, codebook, log_param_q):
    bs, H, W, D = feat_nhwc.shape
    z = feat_nhwc.reshape(-1, D)                               # bf16 straight in
    npix = z.shape[0]
    K = codebook.shape[0]
    param_q = 1.0 + jnp.exp(log_param_q)
    precision = 1.0 / jnp.maximum(param_q, 1e-10)
    w = 0.5 * precision
    cb = codebook.astype(jnp.float32)                          # (K, D), for z_q
    cbst = (2.0 * w) * cb.T                                    # (D, K), scale folded in
    cwsq = (w * jnp.sum(cb * cb, axis=1)).reshape(1, K)

    tp = min(256, _round_up(npix, 8))
    npad = _round_up(npix, tp)
    if npad != npix:
        z = jnp.pad(z, ((0, npad - npix), (0, 0)))
    nt = npad // tp

    kernel = functools.partial(_vq_kernel, npix=npix, tp=tp)
    zq, idx, hist, plogp, sqd = pl.pallas_call(
        kernel,
        out_shape=(jax.ShapeDtypeStruct((npad, D), jnp.bfloat16),
                   jax.ShapeDtypeStruct((npad, 1), jnp.int32),
                   jax.ShapeDtypeStruct((nt, K), jnp.float32),
                   jax.ShapeDtypeStruct((nt, 1), jnp.float32),
                   jax.ShapeDtypeStruct((nt, 1), jnp.float32)),
        grid_spec=pltpu.PrefetchScalarGridSpec(
            num_scalar_prefetch=0,
            grid=(nt,),
            in_specs=[pl.BlockSpec((tp, D), lambda i: (i, 0)),
                      pl.BlockSpec((D, K), lambda i: (0, 0)),   # resident codebook^T
                      pl.BlockSpec((1, K), lambda i: (0, 0)),
                      pl.BlockSpec((K, D), lambda i: (0, 0))],  # resident codebook
            out_specs=(pl.BlockSpec((tp, D), lambda i: (i, 0)),
                       pl.BlockSpec((tp, 1), lambda i: (i, 0)),
                       pl.BlockSpec((1, K), lambda i: (i, 0)),
                       pl.BlockSpec((1, 1), lambda i: (i, 0)),
                       pl.BlockSpec((1, 1), lambda i: (i, 0)))),
        compiler_params=pltpu.CompilerParams(
            dimension_semantics=("parallel",),
            vmem_limit_bytes=_VMEM_LIMIT),
    )(z, cbst, cwsq, cb)

    kld_discrete = jnp.sum(plogp) / bs
    kld_continuous = jnp.sum(sqd) * w / bs
    loss = kld_discrete + kld_continuous
    indices = idx[:npix, 0].reshape(bs, H, W)
    avg_probs = jnp.sum(hist, axis=0) / npix
    perplexity = jnp.exp(-jnp.sum(avg_probs * jnp.log(avg_probs + 1e-7)))
    zq_nhwc = zq[:npix].reshape(bs, H, W, D)
    return zq_nhwc, loss, indices, perplexity


# ------------------------------ reconstruction loss -----------------------------------
def _sse_kernel(a_ref, b_ref, o_ref, acc_ref):
    @pl.when(pl.program_id(0) == 0)
    def _():
        acc_ref[...] = jnp.zeros_like(acc_ref)
    d = a_ref[...] - b_ref[...]
    acc_ref[...] += jnp.sum(d * d, axis=0, keepdims=True)
    @pl.when(pl.program_id(0) == pl.num_programs(0) - 1)
    def _():
        o_ref[...] = jnp.sum(acc_ref[...], axis=1, keepdims=True)


def reconstruction_loss(x_rec, x):
    n = x_rec.size
    a = x_rec.reshape(-1).astype(jnp.float32)
    b = x.reshape(-1).astype(jnp.float32)
    rows = -(-n // 128)
    tr = min(512, _round_up(rows, 8))
    rows_p = _round_up(rows, tr)
    npad = rows_p * 128
    if npad != n:
        a = jnp.pad(a, (0, npad - n))
        b = jnp.pad(b, (0, npad - n))
    a = a.reshape(rows_p, 128)
    b = b.reshape(rows_p, 128)
    sse = pl.pallas_call(
        _sse_kernel,
        out_shape=jax.ShapeDtypeStruct((1, 1), jnp.float32),
        grid_spec=pltpu.PrefetchScalarGridSpec(
            num_scalar_prefetch=0,
            grid=(rows_p // tr,),
            in_specs=[pl.BlockSpec((tr, 128), lambda i: (i, 0)),
                      pl.BlockSpec((tr, 128), lambda i: (i, 0))],
            out_specs=pl.BlockSpec((1, 1), lambda i: (0, 0)),
            scratch_shapes=[pltpu.VMEM((1, 128), jnp.float32)]),
        compiler_params=pltpu.CompilerParams(
            dimension_semantics=("arbitrary",),
            vmem_limit_bytes=_VMEM_LIMIT),
    )(a, b)[0, 0]
    mse = sse / n
    return float(np.prod(x.shape[1:])) * jnp.log(mse) / 2.0


# ---------------------------------- full forward --------------------------------------
def gaussian_sqvae_forward(params, x_nchw):
    x_nhwc = jnp.transpose(x_nchw, (0, 2, 3, 1))
    x_bf16 = x_nhwc.astype(jnp.bfloat16)
    # stand-in feature extractor: pyramid at reductions 4 / 8 / 16 (NHWC, bf16)
    f1 = conv2d(x_bf16, params['fe'][0], stride=4, padding=0, relu=True)
    f2 = conv2d(f1, params['fe'][1], stride=2, padding=0, relu=True)
    f3 = conv2d(f2, params['fe'][2], stride=2, padding=0, relu=True)
    features = [f1, f2, f3]

    quants, quant_indices, perplexitys = [], [], []
    loss = jnp.float32(0.0)
    for i, feat in enumerate(features):
        zq, l, idx, ppl = vq_forward(feat, params['codebooks'][i],
                                     params['log_param_q'][i])
        quants.append(zq)
        quant_indices.append(idx)
        perplexitys.append(ppl)
        loss = loss + l

    h = decoder(quants[-1], params['dec'][0])
    h = jnp.concatenate([h, quants[-2]], axis=-1)
    h = decoder(h, params['dec'][1])
    h = jnp.concatenate([h, quants[-3]], axis=-1)
    h = decoder(h, params['dec'][2])
    rec_nhwc = decoder(h, params['dec'][3], out_dtype=jnp.float32)
    rec_nchw = jnp.transpose(rec_nhwc, (0, 3, 1, 2))

    return {'quantize_loss': loss,
            'quant_indices': quant_indices,
            'perplexity': perplexitys,
            'images': rec_nchw,
            'reconstraction_loss': reconstruction_loss(rec_nhwc, x_nhwc)}


# ---------------------------------- parameter init ------------------------------------
def conv_params(key, kh, kw, cin, cout):
    k1, k2 = jax.random.split(key)
    w = jax.random.normal(k1, (kh, kw, cin, cout), jnp.float32) / np.sqrt(kh * kw * cin)
    b = 0.01 * jax.random.normal(k2, (cout,), jnp.float32)
    return pack_conv(w, b)


def decoder_params(key, in_ch, out_ch, ch, n_res, n_res_ch):
    keys = jax.random.split(key, 2 + 2 * n_res)
    res = []
    for i in range(n_res):
        res.append({'c1': conv_params(keys[1 + 2 * i], 3, 3, ch, n_res_ch),
                    'c2': conv_params(keys[2 + 2 * i], 1, 1, n_res_ch, ch)})
    k1, k2 = jax.random.split(keys[-1])
    wt = jax.random.normal(k1, (4, 4, ch, out_ch), jnp.float32) / np.sqrt(16 * ch)
    bt = 0.01 * jax.random.normal(k2, (out_ch,), jnp.float32)
    return {'conv_in': conv_params(keys[0], 3, 3, in_ch, ch),
            'res': res,
            'deconv': pack_deconv(wt, bt)}


def init_params(key, n_embed=512):
    ks = jax.random.split(key, 10)
    fe = [conv_params(ks[0], 4, 4, 3, 256),
          conv_params(ks[1], 2, 2, 256, 512),
          conv_params(ks[2], 2, 2, 512, 1024)]
    codebooks = [jax.random.normal(ks[3], (n_embed, 256), jnp.float32),
                 jax.random.normal(ks[4], (n_embed, 512), jnp.float32),
                 jax.random.normal(ks[5], (n_embed, 1024), jnp.float32)]
    dec = [decoder_params(ks[6], 1024, 512, 1024, 2, 1024),
           decoder_params(ks[7], 1024, 256, 512, 2, 512),
           decoder_params(ks[8], 512, 256, 256, 2, 256),
           decoder_params(ks[9], 256, 3, 128, 2, 128)]
    log_param_q = jnp.full((3,), math.log(20.0), jnp.float32)
    return {'fe': fe, 'codebooks': codebooks, 'dec': dec,
            'log_param_q': log_param_q}


if __name__ == "__main__":
    key = jax.random.PRNGKey(0)
    pkey, xkey = jax.random.split(key)
    params = init_params(pkey)
    x = jax.random.normal(xkey, (2, 3, 32, 32), jnp.float32)   # NCHW input
    ret = gaussian_sqvae_forward(params, x)
    jax.block_until_ready((ret['images'], ret['quantize_loss'],
                           ret['reconstraction_loss'],
                           ret['perplexity'], ret['quant_indices']))
    print("KERNEL_OK")
</pallas_src>

<mosaic_0001>
module attributes {stable_mosaic.version = 11 : i64} {
  func.func @kernel(%arg0: i32, %arg1: i32, %arg2: i32, %arg3: memref<128x128xbf16, #tpu.memory_space<vmem>>, %arg4: memref<128x256xbf16, #tpu.memory_space<vmem>>, %arg5: memref<1x256xf32, #tpu.memory_space<vmem>>, %arg6: memref<128x256xbf16, #tpu.memory_space<vmem>>, %arg7: memref<128x256xf32, #tpu.memory_space<vmem>>) attributes {dimension_semantics = [#tpu.dimension_semantics<parallel>, #tpu.dimension_semantics<parallel>, #tpu.dimension_semantics<arbitrary>], iteration_bounds = array<i64: 1, 1, 1>, scalar_prefetch = 0 : i64, scratch_operands = 1 : i64, tpu.core_type = #tpu.core_type<tc>, window_params = [{transform_indices = @transform_0, window_bounds = array<i64: 128, 128>}, {transform_indices = @transform_1, window_bounds = array<i64: 128, 256>}, {transform_indices = @transform_2, window_bounds = array<i64: 1, 256>}, {transform_indices = @transform_3, window_bounds = array<i64: 128, 256>}]} {
    %c0_i32 = arith.constant 0 : i32
    %0 = arith.cmpi eq, %arg2, %c0_i32 : i32
    %1 = arith.extui %0 : i1 to i32
    %c0_i32_0 = arith.constant 0 : i32
    %2 = arith.cmpi ne, %1, %c0_i32_0 : i32
    scf.if %2 {
      %cst_10 = arith.constant 0.000000e+00 : f32
      %12 = vector.broadcast %cst_10 : f32 to vector<128x256xf32>
      %c0_11 = arith.constant 0 : index
      %c0_12 = arith.constant 0 : index
      %13 = vector.load %arg7[%c0_11, %c0_12] : memref<128x256xf32, #tpu.memory_space<vmem>>, vector<128x256xf32>
      tpu.vector_store %arg7[%c0_11, %c0_12], %12 {strides = array<i32>} : memref<128x256xf32, #tpu.memory_space<vmem>>, vector<128x256xf32>,
    } else {
    }
    %c0 = arith.constant 0 : index
    %c0_1 = arith.constant 0 : index
    %3 = vector.load %arg3[%c0, %c0_1] : memref<128x128xbf16, #tpu.memory_space<vmem>>, vector<128x128xbf16>
    %c0_2 = arith.constant 0 : index
    %c0_3 = arith.constant 0 : index
    %4 = vector.load %arg7[%c0_2, %c0_3] : memref<128x256xf32, #tpu.memory_space<vmem>>, vector<128x256xf32>
    %c0_4 = arith.constant 0 : index
    %c0_5 = arith.constant 0 : index
    %5 = vector.load %arg4[%c0_4, %c0_5] : memref<128x256xbf16, #tpu.memory_space<vmem>>, vector<128x256xbf16>
    %cst = arith.constant dense<0.000000e+00> : vector<128x256xf32>
    %6 = tpu.matmul %3, %5, %cst {dimension_numbers = #tpu.dot_dimension_numbers<[1], [0], [0], [1], [0, 0, 1, 1], [], []>} : vector<128x128xbf16>, vector<128x256xbf16>, vector<128x256xf32> -> vector<128x256xf32>
    %7 = arith.addf %4, %6 : vector<128x256xf32>
    %c0_6 = arith.constant 0 : index
    %c0_7 = arith.constant 0 : index
    %8 = vector.load %arg7[%c0_6, %c0_7] : memref<128x256xf32, #tpu.memory_space<vmem>>, vector<128x256xf32>
    tpu.vector_store %arg7[%c0_6, %c0_7], %7 {strides = array<i32>} : memref<128x256xf32, #tpu.memory_space<vmem>>, vector<128x256xf32>,
    %c0_i32_8 = arith.constant 0 : i32
    %9 = arith.cmpi eq, %arg2, %c0_i32_8 : i32
    %10 = arith.extui %9 : i1 to i32
    %c0_i32_9 = arith.constant 0 : i32
    %11 = arith.cmpi ne, %10, %c0_i32_9 : i32
    scf.if %11 {
      %c0_10 = arith.constant 0 : index
      %c0_11 = arith.constant 0 : index
      %12 = vector.load %arg7[%c0_10, %c0_11] : memref<128x256xf32, #tpu.memory_space<vmem>>, vector<128x256xf32>
      %c0_12 = arith.constant 0 : index
      %c0_13 = arith.constant 0 : index
      %13 = vector.load %arg5[%c0_12, %c0_13] : memref<1x256xf32, #tpu.memory_space<vmem>>, vector<1x256xf32>
      %14 = vector.broadcast %13 : vector<1x256xf32> to vector<128x256xf32>
      %15 = arith.addf %12, %14 : vector<128x256xf32>
      %cst_14 = arith.constant 0.000000e+00 : f32
      %16 = vector.broadcast %cst_14 : f32 to vector<128x256xf32>
      %17 = arith.maximumf %15, %16 : vector<128x256xf32>
      %18 = arith.truncf %17 : vector<128x256xf32> to vector<128x256xbf16>
      %c0_15 = arith.constant 0 : index
      %c0_16 = arith.constant 0 : index
      %19 = vector.load %arg6[%c0_15, %c0_16] : memref<128x256xbf16, #tpu.memory_space<vmem>>, vector<128x256xbf16>
      tpu.vector_store %arg6[%c0_15, %c0_16], %18 {strides = array<i32>} : memref<128x256xbf16, #tpu.memory_space<vmem>>, vector<128x256xbf16>,
    } else {
    }
    return
  }
  func.func @transform_0(%arg0: i32, %arg1: i32, %arg2: i32) -> (i32, i32) {
    %c0_i32 = arith.constant 0 : i32
    return %arg0, %arg2 : i32, i32
  }
  func.func @transform_1(%arg0: i32, %arg1: i32, %arg2: i32) -> (i32, i32) {
    %c0_i32 = arith.constant 0 : i32
    return %arg2, %arg1 : i32, i32
  }
  func.func @transform_2(%arg0: i32, %arg1: i32, %arg2: i32) -> (i32, i32) {
    %c0_i32 = arith.constant 0 : i32
    %c0_i32_0 = arith.constant 0 : i32
    return %c0_i32, %arg1 : i32, i32
  }
  func.func @transform_3(%arg0: i32, %arg1: i32, %arg2: i32) -> (i32, i32) {
    %c0_i32 = arith.constant 0 : i32
    return %arg0, %arg1 : i32, i32
  }
}

</mosaic_0001>

<bundles_post_ra>
// kernel: tpu_custom_call.1
= control target key start
LH: loop header
LB: loop body
LE: loop exit
PB: predicated region body
PF: predicated region fallthrough
CT: control target
= control target key end

     0   :  { %8 = vsyncpa [#allocation4], 0  ;;  %s935_s0 = inlined_call_operand.hbm [shape: bf16[128,128], index: 0, kind: input, shape index: {}]   ;;  %s936_s1 = inlined_call_operand.hbm [shape: bf16[128,256], index: 1, kind: input, shape index: {}]   ;;  %s937_s2 = inlined_call_operand.hbm [shape: f32[1,256], index: 2, kind: input, shape index: {}]   ;;  %s938_s3 = inlined_call_operand.hbm [shape: bf16[128,256], index: 3, kind: output, shape index: {}]  }
   0x1   :  { %9 = vsyncpa [#allocation7], 0  ;;  %s28_s14 = sshll.u32 %s936_s1, 4  ;;  %s29_s14 = int_to_ptr.hbm [resolvable:$true] %s28_s14 }
   0x2   :  { %10 = vsyncpa [#allocation5], 0  ;;  %s853_s15 = smov [#allocation6]   ;;  %s15_s19 = sshll.u32 %s935_s0, 4  ;;  %s16_s19 = int_to_ptr.hbm [resolvable:$true] %s15_s19 }
   0x3   :  { %s30_s16 = sshll.u32 %s853_s15, 4  ;;  %s854_s20 = smov 128   ;;  %s31_s16 = int_to_ptr.vmem [resolvable:$true] %s30_s16 }
   0x4   :  { %s855_s21 = smov 8   ;;  %s856_s22 = smov [#allocation3]  }
   0x5   :  { %36 = dma.hbm_to_vmem [thread:$0]  %s29_s14, 2048, %s31_s16, [#allocation7], %s854_s20, %s854_s20, %s855_s21  }
   0x6   :  { %s17_s23 = sshll.u32 %s856_s22, 4  ;;  %s857_s1 = smov 64   ;;  %s18_s23 = int_to_ptr.vmem [resolvable:$true] %s17_s23 }
   0x7   :  { %s858_s24 = smov 4   ;;  %s42_s27 = sshll.u32 %s937_s2, 4  ;;  %s43_s27 = int_to_ptr.hbm [resolvable:$true] %s42_s27 }
   0x8   :  { %23 = dma.hbm_to_vmem [thread:$0]  %s16_s19, 1024, %s18_s23, [#allocation4], %s857_s1, %s857_s1, %s858_s24  }
   0x9   :  { %s859_s28 = smov [#allocation8]  }
   0xa   :  { %s44_s0 = sshll.u32 %s859_s28, 4  ;;  %s45_s0 = int_to_ptr.vmem [resolvable:$true] %s44_s0 }
   0xb   :  { %47 = dma.hbm_to_vmem [thread:$0]  %s43_s27, 32, %s45_s0, [#allocation7]  }
   0xc   :  { %847 = dma.done.wait [#allocation4], 1024  }
   0xd   :  { %848 = vsyncadd [#allocation4], 4294966272 }
   0xe   :  { %849 = dma.done.wait [#allocation7], 2080  }
   0xf   :  { %850 = vsyncadd [#allocation7], 4294965216  ;;  %v697_v0 = vld [vmem:[#allocation6 + $0x70] sm:$0xf]  ;;  %v726_v1 = vld [vmem:[#allocation6 + $0x74] sm:$0xf0] }
  0x10   :  { %v725_v2 = vld [vmem:[#allocation6 + $0x74] sm:$0xf]  ;;  %v698_v3 = vor.u32 %v726_v1, %v697_v0  ;;  %v699_v4 = vld [vmem:[#allocation6 + $0x78] sm:$0xf0]  ;;  %v689_v5 = vld [vmem:[#allocation6 + $0x60] sm:$0xf] }
  0x11   :  { %v724_v6 = vld [vmem:[#allocation6 + $0x64] sm:$0xf0]  ;;  %v702_v7 = vor.u32 %v725_v2, %v699_v4  ;;  %v723_v8 = vld [vmem:[#allocation6 + $0x64] sm:$0xf]  ;;  %v691_v9 = vld [vmem:[#allocation6 + $0x68] sm:$0xf0] }
  0x12   :  { %288 = vmatpush.bf16.msra.mxu0 %v698_v3  ;;  %727 = vmatpush.bf16.msra.mxu2 %v698_v3  ;;  %v690_v10 = vor.u32 %v724_v6, %v689_v5  ;;  %v694_v11 = vor.u32 %v723_v8, %v691_v9  ;;  %v681_v12 = vld [vmem:[#allocation6 + $0x50] sm:$0xf]  ;;  %v722_v13 = vld [vmem:[#allocation6 + $0x54] sm:$0xf0]  ;;  %v721_v14 = vld [vmem:[#allocation6 + $0x54] sm:$0xf] }
  0x13   :  { %337 = vmatpush.bf16.msra.mxu1 %v702_v7  ;;  %735 = vmatpush.bf16.msra.mxu3 %v702_v7  ;;  %v683_v15 = vld [vmem:[#allocation6 + $0x58] sm:$0xf0]  ;;  %v682_v16 = vor.u32 %v722_v13, %v681_v12  ;;  %v673_v18 = vld [vmem:[#allocation6 + $0x40] sm:$0xf]  ;;  %v720_v19 = vld [vmem:[#allocation6 + $0x44] sm:$0xf0] }
  0x14   :  { %v686_v17 = vor.u32 %v721_v14, %v683_v15  ;;  %v719_v20 = vld [vmem:[#allocation6 + $0x44] sm:$0xf]  ;;  %v675_v21 = vld [vmem:[#allocation6 + $0x48] sm:$0xf0]  ;;  %v674_v22 = vor.u32 %v720_v19, %v673_v18  ;;  %v665_v24 = vld [vmem:[#allocation6 + $0x30] sm:$0xf] }
  0x15   :  { %v678_v23 = vor.u32 %v719_v20, %v675_v21  ;;  %v718_v25 = vld [vmem:[#allocation6 + $0x34] sm:$0xf0]  ;;  %v717_v26 = vld [vmem:[#allocation6 + $0x34] sm:$0xf]  ;;  %v667_v27 = vld [vmem:[#allocation6 + $0x38] sm:$0xf0] }
  0x16   :  { %289 = vmatpush.bf16.msra.mxu0 %v690_v10  ;;  %728 = vmatpush.bf16.msra.mxu2 %v690_v10  ;;  %v666_v28 = vor.u32 %v718_v25, %v665_v24  ;;  %v670_v29 = vor.u32 %v717_v26, %v667_v27  ;;  %v657_v30 = vld [vmem:[#allocation6 + $0x20] sm:$0xf]  ;;  %v716_v31 = vld [vmem:[#allocation6 + $0x24] sm:$0xf0]  ;;  %v715_v32 = vld [vmem:[#allocation6 + $0x24] sm:$0xf] }
  0x17   :  { %338 = vmatpush.bf16.msra.mxu1 %v694_v11  ;;  %736 = vmatpush.bf16.msra.mxu3 %v694_v11  ;;  %v659_v33 = vld [vmem:[#allocation6 + $0x28] sm:$0xf0]  ;;  %v658_v34 = vor.u32 %v716_v31, %v657_v30  ;;  %v649_v36 = vld [vmem:[#allocation6 + $0x10] sm:$0xf]  ;;  %v714_v37 = vld [vmem:[#allocation6 + $0x14] sm:$0xf0] }
  0x18   :  { %v662_v35 = vor.u32 %v715_v32, %v659_v33  ;;  %v713_v38 = vld [vmem:[#allocation6 + $0x14] sm:$0xf]  ;;  %v651_v39 = vld [vmem:[#allocation6 + $0x18] sm:$0xf0]  ;;  %v650_v40 = vor.u32 %v714_v37, %v649_v36  ;;  %v641_v42 = vld [vmem:[#allocation6] sm:$0xf] }
  0x19   :  { %v654_v41 = vor.u32 %v713_v38, %v651_v39  ;;  %v712_v43 = vld [vmem:[#allocation6 + $0x4] sm:$0xf0]  ;;  %v711_v44 = vld [vmem:[#allocation6 + $0x4] sm:$0xf]  ;;  %v643_v45 = vld [vmem:[#allocation6 + $0x8] sm:$0xf0] }
  0x1a   :  { %290 = vmatpush.bf16.msra.mxu0 %v682_v16  ;;  %729 = vmatpush.bf16.msra.mxu2 %v682_v16  ;;  %v642_v46 = vor.u32 %v712_v43, %v641_v42  ;;  %v646_v47 = vor.u32 %v711_v44, %v643_v45  ;;  %v703_v48 = vld [vmem:[#allocation3] sm:$0xff]  ;;  %v704_v50 = vld [vmem:[#allocation3 + $0x8] sm:$0xff]  ;;  %v705_v52 = vld [vmem:[#allocation3 + $0x10] sm:$0xff]  ;;  %s860_s2 = smov [#allocation9]   ;;  %s593_s5 = sshll.u32 %s938_s3, 4  ;;  %s594_s5 = int_to_ptr.hbm [resolvable:$true] %s593_s5 }
  0x1b   :  { %339 = vmatpush.bf16.msra.mxu1 %v686_v17  ;;  %737 = vmatpush.bf16.msra.mxu3 %v686_v17  ;;  %v707_v49 = vld [vmem:[#allocation3 + $0x20] sm:$0xff]  ;;  %v708_v51 = vld [vmem:[#allocation3 + $0x28] sm:$0xff]  ;;  %v709_v53 = vld [vmem:[#allocation3 + $0x30] sm:$0xff]  ;;  %s591_s29 = sshll.u32 %s860_s2, 4  ;;  %s592_s29 = int_to_ptr.vmem [resolvable:$true] %s591_s29 }
  0x1c   :  { %v706_v54 = vld [vmem:[#allocation3 + $0x18] sm:$0xff]  ;;  %v485_v56 = vld [vmem:[#allocation8] sm:$0x3] }
  0x1d   :  { %v710_v55 = vld [vmem:[#allocation3 + $0x38] sm:$0xff]  ;;  %v893_v57 = vperm.slane %v485_v56, 0  ;;  %v895_v58 = vperm.slane %v485_v56, 1 }
  0x1e   :  { %291 = vmatpush.bf16.msra.mxu0 %v674_v22  ;;  %730 = vmatpush.bf16.msra.mxu2 %v674_v22 }
  0x1f   :  { %340 = vmatpush.bf16.msra.mxu1 %v678_v23  ;;  %738 = vmatpush.bf16.msra.mxu3 %v678_v23 }
  0x22   :  { %292 = vmatpush.bf16.msra.mxu0 %v666_v28  ;;  %731 = vmatpush.bf16.msra.mxu2 %v666_v28 }
  0x23   :  { %341 = vmatpush.bf16.msra.mxu1 %v670_v29  ;;  %739 = vmatpush.bf16.msra.mxu3 %v670_v29 }
  0x26   :  { %293 = vmatpush.bf16.msra.mxu0 %v658_v34  ;;  %732 = vmatpush.bf16.msra.mxu2 %v658_v34 }
  0x27   :  { %342 = vmatpush.bf16.msra.mxu1 %v662_v35  ;;  %740 = vmatpush.bf16.msra.mxu3 %v662_v35 }
  0x2a   :  { %294 = vmatpush.bf16.msra.mxu0 %v650_v40  ;;  %733 = vmatpush.bf16.msra.mxu2 %v650_v40 }
  0x2b   :  { %343 = vmatpush.bf16.msra.mxu1 %v654_v41  ;;  %741 = vmatpush.bf16.msra.mxu3 %v654_v41 }
  0x2e   :  { %295 = vmatpush.bf16.msra.mxu0 %v642_v46  ;;  %734 = vmatpush.bf16.msra.mxu2 %v642_v46 }
  0x2f   :  { %344 = vmatpush.bf16.msra.mxu1 %v646_v47  ;;  %742 = vmatpush.bf16.msra.mxu3 %v646_v47 }
  0x31   :  { %296 = vmatmul.bf16.vlgmr.msra.gmra.mxu0 %v703_v48  ;;  %316 = vmatmul.bf16.vlgmr.msra.gmra.mxu2 %v707_v49 }
  0x32   :  { %345 = vmatmul.bf16.vlgmr.msra.gmra.mxu1 %v703_v48  ;;  %365 = vmatmul.bf16.vlgmr.msra.gmra.mxu3 %v707_v49 }
  0x41   :  { %301 = vmatmul.bf16.gmra.mxu0 %v704_v50  ;;  %321 = vmatmul.bf16.gmra.mxu2 %v708_v51 }
  0x42   :  { %350 = vmatmul.bf16.gmra.mxu1 %v704_v50  ;;  %370 = vmatmul.bf16.gmra.mxu3 %v708_v51 }
  0x51   :  { %306 = vmatmul.bf16.gmra.mxu0 %v705_v52  ;;  %326 = vmatmul.bf16.gmra.mxu2 %v709_v53 }
  0x52   :  { %355 = vmatmul.bf16.gmra.mxu1 %v705_v52  ;;  %375 = vmatmul.bf16.gmra.mxu3 %v709_v53 }
  0x61   :  { %311 = vmatmul.bf16.gmra.mxu0 %v706_v54  ;;  %331 = vmatmul.bf16.gmra.mxu2 %v710_v55 }
  0x62   :  { %360 = vmatmul.bf16.gmra.mxu1 %v706_v54  ;;  %380 = vmatmul.bf16.gmra.mxu3 %v710_v55 }
  0xae   :  { %v297_v59 = vpop.f32.mrf.mxu0 }
  0xaf   :  { %v491_v60 = vadd.f32 %v893_v57, %v297_v59  ;;  %v346_v61 = vpop.f32.mrf.mxu1 }
  0xb0   :  { %v492_v62 = vadd.f32 %v895_v58, %v346_v61 }
  0xb1   :  { %v523_v63 = vmax.f32 %v491_v60, 0.0 }
  0xb2   :  { %v524_v0 = vmax.f32 %v492_v62, 0.0 }
  0xb4   :  { %v555_v1 = vpack.c.bf16 %v524_v0, %v523_v63  ;;  %v317_v2 = vpop.f32.mrf.mxu2 }
  0xb5   :  { %v507_v3 = vadd.f32 %v893_v57, %v317_v2  ;;  %v366_v4 = vpop.f32.mrf.mxu3 }
  0xb6   :  { %571 = vst [vmem:[#allocation9] sm:$0xff] %v555_v1  ;;  %v508_v5 = vadd.f32 %v895_v58, %v366_v4  ;;  %v299_v6 = vpop.f32.mrf.mxu0 }
  0xb7   :  { %v539_v7 = vmax.f32 %v507_v3, 0.0  ;;  %v493_v8 = vadd.f32 %v893_v57, %v299_v6  ;;  %v348_v9 = vpop.f32.mrf.mxu1 }
  0xb8   :  { %v540_v10 = vmax.f32 %v508_v5, 0.0  ;;  %v494_v11 = vadd.f32 %v895_v58, %v348_v9 }
  0xb9   :  { %v525_v12 = vmax.f32 %v493_v8, 0.0 }
  0xba   :  { %v563_v13 = vpack.c.bf16 %v540_v10, %v539_v7  ;;  %v526_v14 = vmax.f32 %v494_v11, 0.0 }
  0xbc   :  { %579 = vst [vmem:[#allocation9 + $0x40] sm:$0xff] %v563_v13  ;;  %v556_v15 = vpack.c.bf16 %v526_v14, %v525_v12  ;;  %v319_v16 = vpop.f32.mrf.mxu2 }
  0xbd   :  { %v509_v17 = vadd.f32 %v893_v57, %v319_v16  ;;  %v368_v18 = vpop.f32.mrf.mxu3 }
  0xbe   :  { %572 = vst [vmem:[#allocation9 + $0x8] sm:$0xff] %v556_v15  ;;  %v510_v19 = vadd.f32 %v895_v58, %v368_v18  ;;  %v302_v20 = vpop.f32.mrf.mxu0 }
  0xbf   :  { %v541_v21 = vmax.f32 %v509_v17, 0.0  ;;  %v495_v22 = vadd.f32 %v893_v57, %v302_v20  ;;  %v351_v23 = vpop.f32.mrf.mxu1 }
  0xc0   :  { %v542_v24 = vmax.f32 %v510_v19, 0.0  ;;  %v496_v25 = vadd.f32 %v895_v58, %v351_v23 }
  0xc1   :  { %v527_v26 = vmax.f32 %v495_v22, 0.0 }
  0xc2   :  { %v564_v27 = vpack.c.bf16 %v542_v24, %v541_v21  ;;  %v528_v28 = vmax.f32 %v496_v25, 0.0 }
  0xc4   :  { %580 = vst [vmem:[#allocation9 + $0x48] sm:$0xff] %v564_v27  ;;  %v557_v29 = vpack.c.bf16 %v528_v28, %v527_v26  ;;  %v322_v30 = vpop.f32.mrf.mxu2 }
  0xc5   :  { %v511_v31 = vadd.f32 %v893_v57, %v322_v30  ;;  %v371_v32 = vpop.f32.mrf.mxu3 }
  0xc6   :  { %573 = vst [vmem:[#allocation9 + $0x10] sm:$0xff] %v557_v29  ;;  %v512_v33 = vadd.f32 %v895_v58, %v371_v32  ;;  %v304_v34 = vpop.f32.mrf.mxu0 }
  0xc7   :  { %v543_v35 = vmax.f32 %v511_v31, 0.0  ;;  %v497_v36 = vadd.f32 %v893_v57, %v304_v34  ;;  %v353_v37 = vpop.f32.mrf.mxu1 }
  0xc8   :  { %v544_v38 = vmax.f32 %v512_v33, 0.0  ;;  %v498_v39 = vadd.f32 %v895_v58, %v353_v37 }
  0xc9   :  { %v529_v40 = vmax.f32 %v497_v36, 0.0 }
  0xca   :  { %v565_v41 = vpack.c.bf16 %v544_v38, %v543_v35  ;;  %v530_v42 = vmax.f32 %v498_v39, 0.0 }
  0xcc   :  { %581 = vst [vmem:[#allocation9 + $0x50] sm:$0xff] %v565_v41  ;;  %v558_v43 = vpack.c.bf16 %v530_v42, %v529_v40  ;;  %v324_v44 = vpop.f32.mrf.mxu2 }
  0xcd   :  { %v513_v45 = vadd.f32 %v893_v57, %v324_v44  ;;  %v373_v46 = vpop.f32.mrf.mxu3 }
  0xce   :  { %574 = vst [vmem:[#allocation9 + $0x18] sm:$0xff] %v558_v43  ;;  %v514_v47 = vadd.f32 %v895_v58, %v373_v46  ;;  %v307_v48 = vpop.f32.mrf.mxu0 }
  0xcf   :  { %v545_v49 = vmax.f32 %v513_v45, 0.0  ;;  %v499_v50 = vadd.f32 %v893_v57, %v307_v48  ;;  %v356_v51 = vpop.f32.mrf.mxu1 }
  0xd0   :  { %v546_v52 = vmax.f32 %v514_v47, 0.0  ;;  %v500_v53 = vadd.f32 %v895_v58, %v356_v51 }
  0xd1   :  { %v531_v54 = vmax.f32 %v499_v50, 0.0 }
  0xd2   :  { %v566_v55 = vpack.c.bf16 %v546_v52, %v545_v49  ;;  %v532_v56 = vmax.f32 %v500_v53, 0.0 }
  0xd4   :  { %582 = vst [vmem:[#allocation9 + $0x58] sm:$0xff] %v566_v55  ;;  %v559_v59 = vpack.c.bf16 %v532_v56, %v531_v54  ;;  %v327_v60 = vpop.f32.mrf.mxu2 }
  0xd5   :  { %v515_v61 = vadd.f32 %v893_v57, %v327_v60  ;;  %v376_v62 = vpop.f32.mrf.mxu3 }
  0xd6   :  { %575 = vst [vmem:[#allocation9 + $0x20] sm:$0xff] %v559_v59  ;;  %v516_v63 = vadd.f32 %v895_v58, %v376_v62  ;;  %v309_v0 = vpop.f32.mrf.mxu0 }
  0xd7   :  { %v547_v1 = vmax.f32 %v515_v61, 0.0  ;;  %v501_v2 = vadd.f32 %v893_v57, %v309_v0  ;;  %v358_v3 = vpop.f32.mrf.mxu1 }
  0xd8   :  { %v548_v4 = vmax.f32 %v516_v63, 0.0  ;;  %v502_v5 = vadd.f32 %v895_v58, %v358_v3 }
  0xd9   :  { %v533_v6 = vmax.f32 %v501_v2, 0.0 }
  0xda   :  { %v567_v7 = vpack.c.bf16 %v548_v4, %v547_v1  ;;  %v534_v8 = vmax.f32 %v502_v5, 0.0 }
  0xdc   :  { %583 = vst [vmem:[#allocation9 + $0x60] sm:$0xff] %v567_v7  ;;  %v560_v9 = vpack.c.bf16 %v534_v8, %v533_v6  ;;  %v329_v10 = vpop.f32.mrf.mxu2 }
  0xdd   :  { %v517_v11 = vadd.f32 %v893_v57, %v329_v10  ;;  %v378_v12 = vpop.f32.mrf.mxu3 }
  0xde   :  { %576 = vst [vmem:[#allocation9 + $0x28] sm:$0xff] %v560_v9  ;;  %v518_v13 = vadd.f32 %v895_v58, %v378_v12  ;;  %v312_v14 = vpop.f32.mrf.mxu0 }
  0xdf   :  { %v549_v15 = vmax.f32 %v517_v11, 0.0  ;;  %v503_v16 = vadd.f32 %v893_v57, %v312_v14  ;;  %v361_v17 = vpop.f32.mrf.mxu1 }
  0xe0   :  { %v550_v18 = vmax.f32 %v518_v13, 0.0  ;;  %v504_v19 = vadd.f32 %v895_v58, %v361_v17 }
  0xe1   :  { %v535_v20 = vmax.f32 %v503_v16, 0.0 }
  0xe2   :  { %v568_v21 = vpack.c.bf16 %v550_v18, %v549_v15  ;;  %v536_v22 = vmax.f32 %v504_v19, 0.0 }
  0xe4   :  { %584 = vst [vmem:[#allocation9 + $0x68] sm:$0xff] %v568_v21  ;;  %v561_v23 = vpack.c.bf16 %v536_v22, %v535_v20  ;;  %v332_v24 = vpop.f32.mrf.mxu2 }
  0xe5   :  { %v519_v25 = vadd.f32 %v893_v57, %v332_v24  ;;  %v381_v26 = vpop.f32.mrf.mxu3 }
  0xe6   :  { %577 = vst [vmem:[#allocation9 + $0x30] sm:$0xff] %v561_v23  ;;  %v520_v27 = vadd.f32 %v895_v58, %v381_v26  ;;  %v314_v28 = vpop.f32.mrf.mxu0 }
  0xe7   :  { %v551_v29 = vmax.f32 %v519_v25, 0.0  ;;  %v505_v30 = vadd.f32 %v893_v57, %v314_v28  ;;  %v363_v31 = vpop.f32.mrf.mxu1 }
  0xe8   :  { %v552_v32 = vmax.f32 %v520_v27, 0.0  ;;  %v506_v33 = vadd.f32 %v895_v58, %v363_v31 }
  0xe9   :  { %v537_v34 = vmax.f32 %v505_v30, 0.0 }
  0xea   :  { %v569_v35 = vpack.c.bf16 %v552_v32, %v551_v29  ;;  %v538_v36 = vmax.f32 %v506_v33, 0.0 }
  0xec   :  { %585 = vst [vmem:[#allocation9 + $0x70] sm:$0xff] %v569_v35  ;;  %v562_v37 = vpack.c.bf16 %v538_v36, %v537_v34  ;;  %v334_v38 = vpop.f32.mrf.mxu2 }
  0xed   :  { %v521_v39 = vadd.f32 %v893_v57, %v334_v38  ;;  %v383_v40 = vpop.f32.mrf.mxu3 }
  0xee   :  { %578 = vst [vmem:[#allocation9 + $0x38] sm:$0xff] %v562_v37  ;;  %v522_v41 = vadd.f32 %v895_v58, %v383_v40 }
  0xef   :  { %v553_v42 = vmax.f32 %v521_v39, 0.0 }
  0xf0   :  { %v554_v43 = vmax.f32 %v522_v41, 0.0 }
  0xf2   :  { %v570_v44 = vpack.c.bf16 %v554_v43, %v553_v42 }
  0xf4   :  { %586 = vst [vmem:[#allocation9 + $0x78] sm:$0xff] %v570_v44 }
  0xf5   :  { %599 = dma.vmem_to_hbm [thread:$0]  %s592_s29, 2048, %s594_s5, [#allocation5], %s854_s20, %s854_s20, %s855_s21  }
  0xf6   :  { %851 = dma.done.wait [#allocation5], 2048  }
  0xf7   :  { %852 = vsyncadd [#allocation5], 4294965248 }
  0xf8   :  { %604 = vsyncpa [#allocation4], 1 }
  0xf9   :  { %605 = vsyncpa [#allocation7], 1 }
  0xfa   :  { %606 = vsyncpa [#allocation5], 1 }

</bundles_post_ra>
